<compile_context>
chip_gen: v5e
topology: v5e:2x2
jax: 0.10.0
libtpu: 0.0.40
codegen_flags: <defaults>
</compile_context>

<pallas_src>
import math
import functools

import jax
import jax.numpy as jnp
from jax.experimental import pallas as pl
from jax.experimental.pallas import tpu as pltpu

_LANES = 128                       # lane-dense last dim; contiguous rows of the flat array
_TARGET_BLOCK_BYTES = 2 * 1024 * 1024   # 2 MiB/block: 4 buffers (in+out, double-buffered) = 8 MiB


def _shifted_cosine_cutoff_kernel(d_ref, o_ref, *, cutoff, smooth_width):
    d = d_ref[...].astype(jnp.float32)

    start = cutoff - smooth_width
    mid = cutoff - 0.5 * smooth_width
    scale = math.pi / smooth_width          # trace-time constant: no divide on the VPU
    half_pi = 0.5 * math.pi

    # 0.5 + 0.5*cos(pi*(d - start)/smooth_width)  ==  0.5 - 0.5*sin(x),
    # with x = (d - mid) * scale clamped to [-pi/2, pi/2].
    x = jnp.clip((d - mid) * scale, -half_pi, half_pi)

    # Odd degree-11 polynomial for sin on [-pi/2, pi/2]; |err| < ~1e-7 (f32
    # noise floor).  Much cheaper on the VALU slot than the generic cos
    # expansion + divide, which can make v7x compute-bound on this streaming op.
    z = x * x
    p = -2.5052108385441718e-08
    p = p * z + 2.7557319223985893e-06
    p = p * z - 1.9841269841269841e-04
    p = p * z + 8.3333333333333332e-03
    p = p * z - 1.6666666666666666e-01
    s = x + x * (z * p)
    out = 0.5 - 0.5 * s

    # Exact flat regions, matching the PyTorch in-place masked assignments:
    # exactly 1.0 at/below the smooth-window start, exactly 0.0 past the cutoff.
    out = jnp.where(d <= start, 1.0, out)
    out = jnp.where(d > cutoff, 0.0, out)

    o_ref[...] = out.astype(o_ref.dtype)


def shifted_cosine_cutoff(distances, cutoff=5.0, smooth_width=0.5):
    """Pallas TPU equivalent of ShiftedCosineCutoff.forward.

    Accepts any-shaped float array of distances, returns a flat 1-D array
    (same number of elements, same dtype), matching `.view(-1)`.
    """
    dtype = distances.dtype
    flat = distances.reshape(-1)
    n = flat.shape[0]
    if n == 0:
        return flat

    itemsize = jnp.dtype(dtype).itemsize
    pack = max(8, 32 // itemsize)          # sublane packing: 8 f32, 16 bf16, 32 int8

    n_pad = pl.cdiv(n, _LANES) * _LANES
    padded = n_pad != n
    if padded:
        # Only a ragged tail (n % 128 != 0) pays this extra pad + final slice.
        # TODO(synk): for ragged producers, fuse this op upstream to avoid it.
        flat = jnp.pad(flat, (0, n_pad - n))
    rows = n_pad // _LANES
    x2d = flat.reshape(rows, _LANES)       # zero-copy view when already aligned

    # Largest block <= ~2 MiB, rows a multiple of the sublane packing.
    max_rows = max(pack, (_TARGET_BLOCK_BYTES // (_LANES * itemsize)) // pack * pack)
    if rows <= max_rows:
        block_rows = rows                  # single block == full array (always legal)
    else:
        block_rows = max_rows
    num_blocks = pl.cdiv(rows, block_rows)

    # v7x megacore: avoid an odd block count (one TC would get an extra block).
    if num_blocks > 1 and num_blocks % 2 == 1:
        nb = num_blocks + 1
        br = ((pl.cdiv(rows, nb) + pack - 1) // pack) * pack
        if br >= pack:
            block_rows = br
            num_blocks = pl.cdiv(rows, block_rows)

    kernel = functools.partial(
        _shifted_cosine_cutoff_kernel,
        cutoff=float(cutoff),
        smooth_width=float(smooth_width),
    )

    out2d = pl.pallas_call(
        kernel,
        out_shape=jax.ShapeDtypeStruct((rows, _LANES), dtype),
        grid=(num_blocks,),
        in_specs=[pl.BlockSpec((block_rows, _LANES), lambda i: (i, 0))],
        out_specs=pl.BlockSpec((block_rows, _LANES), lambda i: (i, 0)),
        compiler_params=pltpu.CompilerParams(
            dimension_semantics=("parallel",)
        ),
        cost_estimate=pl.CostEstimate(
            flops=16 * n_pad,
            transcendentals=0,
            bytes_accessed=2 * n_pad * itemsize,
        ),
    )(x2d)

    out_flat = out2d.reshape(-1)
    if padded:
        out_flat = out_flat[:n]
    return out_flat


def _reference(distances, cutoff=5.0, smooth_width=0.5):
    d = distances.reshape(-1).astype(jnp.float32)
    start = cutoff - smooth_width
    smooth = 0.5 + 0.5 * jnp.cos(math.pi * (d - start) / smooth_width)
    out = jnp.where(d > start, smooth, jnp.ones_like(d))
    out = jnp.where(d > cutoff, jnp.zeros_like(d), out)
    return out.astype(distances.dtype)


if __name__ == "__main__":
    key = jax.random.PRNGKey(0)

    # Interatomic distances, e.g. (batch=2, n_atoms=8, n_neighbors=16), in [0, 6).
    k0, k1 = jax.random.split(key)
    distances = jax.random.uniform(
        k0, (2, 8, 16), dtype=jnp.float32, minval=0.0, maxval=6.0
    )
    out = jax.block_until_ready(shifted_cosine_cutoff(distances, 5.0, 0.5))
    ref = _reference(distances, 5.0, 0.5)
    assert out.shape == (distances.size,), out.shape
    assert out.dtype == distances.dtype, out.dtype
    assert jnp.allclose(out, ref, atol=1e-5, rtol=1e-5), "mismatch vs reference"

    # Ragged (non-128-multiple) flat length exercises the pad/slice tail path.
    distances2 = jax.random.uniform(
        k1, (3, 7, 11), dtype=jnp.float32, minval=0.0, maxval=6.0
    )
    out2 = jax.block_until_ready(shifted_cosine_cutoff(distances2, 5.0, 0.5))
    ref2 = _reference(distances2, 5.0, 0.5)
    assert out2.shape == (distances2.size,), out2.shape
    assert jnp.allclose(out2, ref2, atol=1e-5, rtol=1e-5), "mismatch vs reference (ragged)"

    print("KERNEL_OK")
</pallas_src>

<mosaic_0001>
module attributes {stable_mosaic.version = 11 : i64} {
  func.func @_shifted_cosine_cutoff_kernel(%arg0: i32, %arg1: memref<2x128xf32, #tpu.memory_space<vmem>>, %arg2: memref<2x128xf32, #tpu.memory_space<vmem>>) attributes {dimension_semantics = [#tpu.dimension_semantics<parallel>], iteration_bounds = array<i64: 1>, scalar_prefetch = 0 : i64, scratch_operands = 0 : i64, tpu.core_type = #tpu.core_type<tc>, window_params = [{transform_indices = @transform_0, window_bounds = array<i64: 2, 128>}, {transform_indices = @transform_1, window_bounds = array<i64: 2, 128>}]} {
    %c0 = arith.constant 0 : index
    %c0_0 = arith.constant 0 : index
    %0 = vector.load %arg1[%c0, %c0_0] : memref<2x128xf32, #tpu.memory_space<vmem>>, vector<2x128xf32>
    %cst = arith.constant 4.750000e+00 : f32
    %1 = vector.broadcast %cst : f32 to vector<2x128xf32>
    %2 = arith.subf %0, %1 : vector<2x128xf32>
    %cst_1 = arith.constant 6.28318548 : f32
    %3 = vector.broadcast %cst_1 : f32 to vector<2x128xf32>
    %4 = arith.mulf %2, %3 : vector<2x128xf32>
    %cst_2 = arith.constant -1.57079637 : f32
    %cst_3 = arith.constant 1.57079637 : f32
    %5 = vector.broadcast %cst_2 : f32 to vector<2x128xf32>
    %6 = arith.maximumf %5, %4 : vector<2x128xf32>
    %7 = vector.broadcast %cst_3 : f32 to vector<2x128xf32>
    %8 = arith.minimumf %7, %6 : vector<2x128xf32>
    %9 = arith.mulf %8, %8 : vector<2x128xf32>
    %cst_4 = arith.constant -2.50521079E-8 : f32
    %10 = vector.broadcast %cst_4 : f32 to vector<2x128xf32>
    %11 = arith.mulf %10, %9 : vector<2x128xf32>
    %cst_5 = arith.constant 2.75573188E-6 : f32
    %12 = vector.broadcast %cst_5 : f32 to vector<2x128xf32>
    %13 = arith.addf %11, %12 : vector<2x128xf32>
    %14 = arith.mulf %13, %9 : vector<2x128xf32>
    %cst_6 = arith.constant 1.98412701E-4 : f32
    %15 = vector.broadcast %cst_6 : f32 to vector<2x128xf32>
    %16 = arith.subf %14, %15 : vector<2x128xf32>
    %17 = arith.mulf %16, %9 : vector<2x128xf32>
    %cst_7 = arith.constant 0.00833333377 : f32
    %18 = vector.broadcast %cst_7 : f32 to vector<2x128xf32>
    %19 = arith.addf %17, %18 : vector<2x128xf32>
    %20 = arith.mulf %19, %9 : vector<2x128xf32>
    %cst_8 = arith.constant 0.166666672 : f32
    %21 = vector.broadcast %cst_8 : f32 to vector<2x128xf32>
    %22 = arith.subf %20, %21 : vector<2x128xf32>
    %23 = arith.mulf %9, %22 : vector<2x128xf32>
    %24 = arith.mulf %8, %23 : vector<2x128xf32>
    %25 = arith.addf %8, %24 : vector<2x128xf32>
    %cst_9 = arith.constant 5.000000e-01 : f32
    %26 = vector.broadcast %cst_9 : f32 to vector<2x128xf32>
    %27 = arith.mulf %26, %25 : vector<2x128xf32>
    %cst_10 = arith.constant 5.000000e-01 : f32
    %28 = vector.broadcast %cst_10 : f32 to vector<2x128xf32>
    %29 = arith.subf %28, %27 : vector<2x128xf32>
    %cst_11 = arith.constant 4.500000e+00 : f32
    %30 = vector.broadcast %cst_11 : f32 to vector<2x128xf32>
    %31 = arith.cmpf ole, %0, %30 : vector<2x128xf32>
    %cst_12 = arith.constant 1.000000e+00 : f32
    %32 = vector.broadcast %cst_12 : f32 to vector<2x128xf32>
    %33 = arith.select %31, %32, %29 : vector<2x128xi1>, vector<2x128xf32>
    %cst_13 = arith.constant 5.000000e+00 : f32
    %34 = vector.broadcast %cst_13 : f32 to vector<2x128xf32>
    %35 = arith.cmpf ogt, %0, %34 : vector<2x128xf32>
    %cst_14 = arith.constant 0.000000e+00 : f32
    %36 = vector.broadcast %cst_14 : f32 to vector<2x128xf32>
    %37 = arith.select %35, %36, %33 : vector<2x128xi1>, vector<2x128xf32>
    %c0_15 = arith.constant 0 : index
    %c0_16 = arith.constant 0 : index
    %38 = vector.load %arg2[%c0_15, %c0_16] : memref<2x128xf32, #tpu.memory_space<vmem>>, vector<2x128xf32>
    tpu.vector_store %arg2[%c0_15, %c0_16], %37 {strides = array<i32>} : memref<2x128xf32, #tpu.memory_space<vmem>>, vector<2x128xf32>,
    return
  }
  func.func @transform_0(%arg0: i32) -> (i32, i32) {
    %c0_i32 = arith.constant 0 : i32
    %c0_i32_0 = arith.constant 0 : i32
    return %arg0, %c0_i32 : i32, i32
  }
  func.func @transform_1(%arg0: i32) -> (i32, i32) {
    %c0_i32 = arith.constant 0 : i32
    %c0_i32_0 = arith.constant 0 : i32
    return %arg0, %c0_i32 : i32, i32
  }
}

</mosaic_0001>

<bundles_post_ra>
// kernel: tpu_custom_call.1
= control target key start
LH: loop header
LB: loop body
LE: loop exit
PB: predicated region body
PF: predicated region fallthrough
CT: control target
= control target key end

     0   :  { %6 = vsyncpa [#allocation3], 0  ;;  %s140_s0 = inlined_call_operand.hbm [shape: f32[2,128], index: 0, kind: input, shape index: {}]   ;;  %s141_s1 = inlined_call_operand.hbm [shape: f32[2,128], index: 1, kind: output, shape index: {}]  }
   0x1   :  { %7 = vsyncpa [#allocation4], 0  ;;  %s13_s8 = sshll.u32 %s140_s0, 4  ;;  %s122_s9 = smov [#allocation2]   ;;  %s14_s8 = int_to_ptr.hbm [resolvable:$true] %s13_s8 }
   0x2   :  { %s15_s10 = sshll.u32 %s122_s9, 4  ;;  %s16_s10 = int_to_ptr.vmem [resolvable:$true] %s15_s10 }
   0x3   :  { %18 = dma.hbm_to_vmem [thread:$0]  %s14_s8, 32, %s16_s10, [#allocation3]  }
   0x4   :  { %118 = dma.done.wait [#allocation3], 32  }
   0x5   :  { %119 = vsyncadd [#allocation3], 4294967264  ;;  %v23_v0 = vld [vmem:[#allocation2] sm:$0x3]  ;;  %s123_s0 = smov [#allocation5]   ;;  %s54_s14 = sshll.u32 %s141_s1, 4  ;;  %s55_s14 = int_to_ptr.hbm [resolvable:$true] %s54_s14 }
   0x6   :  { %v64_v1 = vadd.f32 -4.75, %v23_v0  ;;  %vm42_vm0 = vcmp.le.f32.partialorder %v23_v0, 4.5  ;;  %s52_s11 = sshll.u32 %s123_s0, 4  ;;  %vm44_vm1 = vcmp.gt.f32.partialorder %v23_v0, 5.0  ;;  %s53_s11 = int_to_ptr.vmem [resolvable:$true] %s52_s11 }
   0x8   :  { %v25_v2 = vmul.f32 6.2831855, %v64_v1 }
   0xa   :  { %v65_v3 = vclamps-f32 %v25_v2, 1.5707964 }
   0xc   :  { %v28_v4 = vmul.f32 %v65_v3, %v65_v3 }
   0xe   :  { %v29_v5 = vmul.f32 -2.5052108e-08, %v28_v4 }
  0x10   :  { %v30_v6 = vadd.f32 2.7557319e-06, %v29_v5 }
  0x12   :  { %v31_v7 = vmul.f32 %v30_v6, %v28_v4 }
  0x14   :  { %v66_v8 = vadd.f32 -0.0001984127, %v31_v7 }
  0x16   :  { %v33_v9 = vmul.f32 %v66_v8, %v28_v4 }
  0x18   :  { %v34_v10 = vadd.f32 0.008333334, %v33_v9 }
  0x1a   :  { %v35_v11 = vmul.f32 %v34_v10, %v28_v4 }
  0x1c   :  { %v67_v12 = vadd.f32 -0.16666667, %v35_v11 }
  0x1e   :  { %v37_v13 = vmul.f32 %v67_v12, %v28_v4 }
  0x20   :  { %v38_v14 = vmul.f32 %v65_v3, %v37_v13 }
  0x22   :  { %v39_v15 = vadd.f32 %v65_v3, %v38_v14 }
  0x24   :  { %v40_v16 = vmul.f32 0.5, %v39_v15 }
  0x26   :  { %v41_v17 = vsub.f32 0.5, %v40_v16 }
  0x28   :  { %v43_v18 = vsel %vm42_vm0, 1.0, %v41_v17 }
  0x29   :  { %v45_v19 = vsel %vm44_vm1, 0.0, %v43_v18 }
  0x2a   :  { %46 = vst [vmem:[#allocation5] sm:$0x3] %v45_v19 }
  0x2b   :  { %57 = dma.vmem_to_hbm [thread:$0]  %s53_s11, 32, %s55_s14, [#allocation4]  }
  0x2c   :  { %120 = dma.done.wait [#allocation4], 32  }
  0x2d   :  { %121 = vsyncadd [#allocation4], 4294967264 }
  0x2e   :  { %62 = vsyncpa [#allocation3], 1 }
  0x2f   :  { %63 = vsyncpa [#allocation4], 1 }

</bundles_post_ra>
